<compile_context>
chip_gen: v5e
topology: v5e:2x2
jax: 0.10.0
libtpu: 0.0.40
codegen_flags: <defaults>
</compile_context>

<pallas_src>
import functools

import jax
import jax.numpy as jnp
from jax.experimental import pallas as pl
from jax.experimental.pallas import tpu as pltpu


# ----------------------------------------------------------------------------
# Fused TCN-block kernel
# ----------------------------------------------------------------------------
def _causal_shift(v, s, col):
    """v[:, t] -> v[:, t - s] with zeros for t < s (s is a static int >= 0)."""
    if s == 0:
        return v
    L = v.shape[-1]
    rolled = pltpu.roll(v, s % L, axis=1)           # XLU rotate (cheap)
    return jnp.where(col >= s, rolled, jnp.zeros_like(v))


def _tcn_block_kernel(*refs, K, dilation, has_down, fuse_linear):
    """One whole TCN Block (optionally + the Linear head), fully fused.

    Per batch element of the (NB, Cin, L) tile:
      h1  = relu(causal_conv1(x))           # dropout1 == identity (eval)
      out = relu(causal_conv2(h1))          # dropout2 == identity (eval)
      res = x  (Cin==Cout)  or  Wd @ x + bd (1x1 downsample, fused)
      y   = relu(out + res)
      o   = y                               # intermediate blocks
          = Wl @ y[:, -1] + bl              # last block: classifier fused
    Causality (the "chomp") is handled with roll+mask; no padded copies.
    """
    it = iter(refs)
    x_ref = next(it)          # (NB, Cin, L)
    w1_ref = next(it)         # (K, Cout, Cin)
    b1_ref = next(it)         # (Cout, 1)
    w2_ref = next(it)         # (K, Cout, Cout)
    b2_ref = next(it)         # (Cout, 1)
    wd_ref = bd_ref = wl_ref = bl_ref = None
    if has_down:
        wd_ref = next(it)     # (Cout, Cin)
        bd_ref = next(it)     # (Cout, 1)
    if fuse_linear:
        wl_ref = next(it)     # (O, Cout)
        bl_ref = next(it)     # (O, 1)
    o_ref = next(it)          # (NB, Cout, L)  or  (NB, O, 1)

    NB, Cin, L = x_ref.shape
    Cout = w1_ref.shape[1]

    b1 = b1_ref[...].astype(jnp.float32)
    b2 = b2_ref[...].astype(jnp.float32)
    if has_down:
        wd = wd_ref[...]
        bd = bd_ref[...].astype(jnp.float32)
    if fuse_linear:
        wl = wl_ref[...]
        bl = bl_ref[...].astype(jnp.float32)
        col_out = jax.lax.broadcasted_iota(jnp.int32, (wl.shape[0], L), 1)

    col_in = jax.lax.broadcasted_iota(jnp.int32, (Cin, L), 1)
    col_mid = jax.lax.broadcasted_iota(jnp.int32, (Cout, L), 1)

    for n in range(NB):                     # NB is small & static -> unrolled
        xn = x_ref[n]                       # (Cin, L)

        # ---- conv1 (causal) + bias + ReLU ----------------------------------
        acc1 = jnp.zeros((Cout, L), jnp.float32)
        for j in range(K):
            s = (K - 1 - j) * dilation      # tap j multiplies x[t - (K-1-j)*d]
            acc1 = acc1 + jnp.dot(w1_ref[j], _causal_shift(xn, s, col_in),
                                  preferred_element_type=jnp.float32)
        h1 = jnp.maximum(acc1 + b1, 0.0).astype(xn.dtype)   # stays in VMEM

        # ---- conv2 (causal) + bias + ReLU (relu2 of the PyTorch block) -----
        acc2 = jnp.zeros((Cout, L), jnp.float32)
        for j in range(K):
            s = (K - 1 - j) * dilation
            acc2 = acc2 + jnp.dot(w2_ref[j], _causal_shift(h1, s, col_mid),
                                  preferred_element_type=jnp.float32)
        out = jnp.maximum(acc2 + b2, 0.0)

        # ---- residual (1x1 downsample fused) + final ReLU ------------------
        if has_down:
            res = jnp.dot(wd, xn, preferred_element_type=jnp.float32) + bd
        else:
            res = xn.astype(jnp.float32)    # Cin == Cout in this case
        y = jnp.maximum(out + res, 0.0)

        if fuse_linear:
            # Linear head on the last time step, fused: the final (Cout, L)
            # activation is never written to HBM.
            logits_all = jnp.dot(wl, y.astype(wl.dtype),
                                 preferred_element_type=jnp.float32)   # (O, L)
            logit = jnp.sum(jnp.where(col_out == L - 1, logits_all, 0.0),
                            axis=1, keepdims=True)                     # (O, 1)
            o_ref[n] = (logit + bl).astype(o_ref.dtype)
        else:
            o_ref[n] = y.astype(o_ref.dtype)


# ----------------------------------------------------------------------------
# Wrappers
# ----------------------------------------------------------------------------
def _weight_norm(v, g):
    """PyTorch weight_norm (dim=0): W = g * V / ||V||_(in,ker) per out channel."""
    norm = jnp.sqrt(jnp.sum(v * v, axis=(1, 2), keepdims=True))
    return (g.reshape(-1, 1, 1) / norm) * v


def tcn_block(x, blk, *, dilation, kernel_size, lin=None, batch_tile=None):
    """One fused TCN block. If `lin=(W, b)` is given, also applies the final
    Linear on the last time step and returns (N, O); otherwise (N, Cout, L)."""
    N, Cin, L = x.shape
    K = kernel_size
    w1 = _weight_norm(blk["v1"], blk["g1"])                 # (Cout, Cin, K)
    w2 = _weight_norm(blk["v2"], blk["g2"])                 # (Cout, Cout, K)
    Cout = w1.shape[0]
    w1t = jnp.transpose(w1, (2, 0, 1))                      # (K, Cout, Cin)
    w2t = jnp.transpose(w2, (2, 0, 1))                      # (K, Cout, Cout)
    b1 = blk["b1"].reshape(Cout, 1)
    b2 = blk["b2"].reshape(Cout, 1)

    has_down = blk["wd"] is not None
    fuse_linear = lin is not None

    # Batch tile: several batch elements per grid step (cuts per-step overhead).
    NB = min(batch_tile if batch_tile else 8, N)
    while N % NB:
        NB -= 1
    grid = (N // NB,)

    args = [x, w1t, b1, w2t, b2]
    in_specs = [
        pl.BlockSpec((NB, Cin, L), lambda i: (i, 0, 0)),
        pl.BlockSpec((K, Cout, Cin), lambda i: (0, 0, 0)),
        pl.BlockSpec((Cout, 1), lambda i: (0, 0)),
        pl.BlockSpec((K, Cout, Cout), lambda i: (0, 0, 0)),
        pl.BlockSpec((Cout, 1), lambda i: (0, 0)),
    ]
    if has_down:
        args += [blk["wd"][:, :, 0], blk["bd"].reshape(Cout, 1)]
        in_specs += [pl.BlockSpec((Cout, Cin), lambda i: (0, 0)),
                     pl.BlockSpec((Cout, 1), lambda i: (0, 0))]
    if fuse_linear:
        lw, lb = lin                                        # (O, Cout), (O,)
        O = lw.shape[0]
        args += [lw, lb.reshape(O, 1)]
        in_specs += [pl.BlockSpec((O, Cout), lambda i: (0, 0)),
                     pl.BlockSpec((O, 1), lambda i: (0, 0))]
        out_shape = jax.ShapeDtypeStruct((N, O, 1), x.dtype)
        out_spec = pl.BlockSpec((NB, O, 1), lambda i: (i, 0, 0))
    else:
        out_shape = jax.ShapeDtypeStruct((N, Cout, L), x.dtype)
        out_spec = pl.BlockSpec((NB, Cout, L), lambda i: (i, 0, 0))

    kernel = functools.partial(_tcn_block_kernel, K=K, dilation=dilation,
                               has_down=has_down, fuse_linear=fuse_linear)
    out = pl.pallas_call(
        kernel,
        out_shape=out_shape,
        grid=grid,
        in_specs=in_specs,
        out_specs=out_spec,
        compiler_params=pltpu.CompilerParams(
            dimension_semantics=("parallel",)),
    )(*args)

    if fuse_linear:
        out = out[:, :, 0]                                  # (N, O)
    return out


def class_tcnet_forward(x, params, *, kernel_size=2):
    h = x
    blocks = params["blocks"]
    last = len(blocks) - 1
    for i, bp in enumerate(blocks):
        lin = (params["lin_w"], params["lin_b"]) if i == last else None
        h = tcn_block(h, bp, dilation=2 ** i, kernel_size=kernel_size, lin=lin)
    return h                                                # (N, output_size)


# ----------------------------------------------------------------------------
# Parameter init (deterministic) + pure-JAX reference for verification
# ----------------------------------------------------------------------------
def init_params(key, num_inputs, num_channels, output_size, kernel_size):
    params = {"blocks": []}
    cin = num_inputs
    for cout in num_channels:
        key, k1, k2, k3, k4, k5, k6 = jax.random.split(key, 7)
        v1 = 0.01 * jax.random.normal(k1, (cout, cin, kernel_size), jnp.float32)
        v2 = 0.01 * jax.random.normal(k2, (cout, cout, kernel_size), jnp.float32)
        blk = {
            "v1": v1,
            "g1": jnp.sqrt(jnp.sum(v1 * v1, axis=(1, 2))),  # weight_norm init
            "b1": 0.01 * jax.random.normal(k3, (cout,), jnp.float32),
            "v2": v2,
            "g2": jnp.sqrt(jnp.sum(v2 * v2, axis=(1, 2))),
            "b2": 0.01 * jax.random.normal(k4, (cout,), jnp.float32),
            "wd": None,
            "bd": None,
        }
        if cin != cout:
            blk["wd"] = 0.01 * jax.random.normal(k5, (cout, cin, 1), jnp.float32)
            blk["bd"] = 0.01 * jax.random.normal(k6, (cout,), jnp.float32)
        params["blocks"].append(blk)
        cin = cout
    key, kw, kb = jax.random.split(key, 3)
    params["lin_w"] = 0.01 * jax.random.normal(kw, (output_size, cin), jnp.float32)
    params["lin_b"] = 0.01 * jax.random.normal(kb, (output_size,), jnp.float32)
    return params


def _ref_causal_conv(x, w, b, dilation):
    N, Cin, L = x.shape
    Cout, _, K = w.shape
    pad = (K - 1) * dilation
    xp = jnp.pad(x, ((0, 0), (0, 0), (pad, 0)))
    out = jnp.zeros((N, Cout, L), jnp.float32)
    for j in range(K):
        out = out + jnp.einsum("oc,ncl->nol", w[:, :, j],
                               xp[:, :, j * dilation:j * dilation + L])
    return out + b.reshape(1, -1, 1)


def ref_forward(x, params):
    h = x
    for i, bp in enumerate(params["blocks"]):
        d = 2 ** i
        w1 = _weight_norm(bp["v1"], bp["g1"])
        w2 = _weight_norm(bp["v2"], bp["g2"])
        o = jnp.maximum(_ref_causal_conv(h, w1, bp["b1"], d), 0.0)
        o = jnp.maximum(_ref_causal_conv(o, w2, bp["b2"], d), 0.0)  # relu2
        r = h if bp["wd"] is None else _ref_causal_conv(h, bp["wd"], bp["bd"], 1)
        h = jnp.maximum(o + r, 0.0)
    return h[:, :, -1] @ params["lin_w"].T + params["lin_b"]


# ----------------------------------------------------------------------------
if __name__ == "__main__":
    key = jax.random.PRNGKey(0)
    N, L = 2, 16
    num_inputs = 4
    num_channels = (8, 8)   # block0 exercises the downsample path, block1 identity
    output_size = 5
    kernel_size = 2

    key, kx = jax.random.split(key)
    x = jax.random.normal(kx, (N, num_inputs, L), dtype=jnp.float32)
    params = init_params(key, num_inputs, num_channels, output_size, kernel_size)

    fwd = jax.jit(functools.partial(class_tcnet_forward, kernel_size=kernel_size))
    out = jax.block_until_ready(fwd(x, params))

    ref = ref_forward(x, params)
    assert out.shape == (N, output_size)
    assert out.dtype == jnp.float32
    assert jnp.allclose(out, ref, atol=1e-4, rtol=1e-4)

    print("KERNEL_OK")
</pallas_src>

<mosaic_0001>
module attributes {stable_mosaic.version = 11 : i64} {
  func.func @_tcn_block_kernel(%arg0: i32, %arg1: memref<2x4x16xf32, #tpu.memory_space<vmem>>, %arg2: memref<2x8x4xf32, #tpu.memory_space<vmem>>, %arg3: memref<8x1xf32, #tpu.memory_space<vmem>>, %arg4: memref<2x8x8xf32, #tpu.memory_space<vmem>>, %arg5: memref<8x1xf32, #tpu.memory_space<vmem>>, %arg6: memref<8x4xf32, #tpu.memory_space<vmem>>, %arg7: memref<8x1xf32, #tpu.memory_space<vmem>>, %arg8: memref<2x8x16xf32, #tpu.memory_space<vmem>>) attributes {dimension_semantics = [#tpu.dimension_semantics<parallel>], iteration_bounds = array<i64: 1>, scalar_prefetch = 0 : i64, scratch_operands = 0 : i64, tpu.core_type = #tpu.core_type<tc>, window_params = [{transform_indices = @transform_0, window_bounds = array<i64: 2, 4, 16>}, {pipeline_mode = #tpu.pipeline_mode<synchronous>, transform_indices = @transform_1, window_bounds = array<i64: 2, 8, 4>}, {pipeline_mode = #tpu.pipeline_mode<synchronous>, transform_indices = @transform_2, window_bounds = array<i64: 8, 1>}, {pipeline_mode = #tpu.pipeline_mode<synchronous>, transform_indices = @transform_3, window_bounds = array<i64: 2, 8, 8>}, {pipeline_mode = #tpu.pipeline_mode<synchronous>, transform_indices = @transform_4, window_bounds = array<i64: 8, 1>}, {pipeline_mode = #tpu.pipeline_mode<synchronous>, transform_indices = @transform_5, window_bounds = array<i64: 8, 4>}, {pipeline_mode = #tpu.pipeline_mode<synchronous>, transform_indices = @transform_6, window_bounds = array<i64: 8, 1>}, {transform_indices = @transform_7, window_bounds = array<i64: 2, 8, 16>}]} {
    %c0 = arith.constant 0 : index
    %c0_0 = arith.constant 0 : index
    %0 = vector.load %arg3[%c0, %c0_0] : memref<8x1xf32, #tpu.memory_space<vmem>>, vector<8x1xf32>
    %c0_1 = arith.constant 0 : index
    %c0_2 = arith.constant 0 : index
    %1 = vector.load %arg5[%c0_1, %c0_2] : memref<8x1xf32, #tpu.memory_space<vmem>>, vector<8x1xf32>
    %c0_3 = arith.constant 0 : index
    %c0_4 = arith.constant 0 : index
    %2 = vector.load %arg6[%c0_3, %c0_4] : memref<8x4xf32, #tpu.memory_space<vmem>>, vector<8x4xf32>
    %c0_5 = arith.constant 0 : index
    %c0_6 = arith.constant 0 : index
    %3 = vector.load %arg7[%c0_5, %c0_6] : memref<8x1xf32, #tpu.memory_space<vmem>>, vector<8x1xf32>
    %4 = tpu.iota {dimensions = array<i32: 1>} : vector<4x16xi32>
    %5 = tpu.iota {dimensions = array<i32: 1>} : vector<8x16xi32>
    %c0_7 = arith.constant 0 : index
    %c0_8 = arith.constant 0 : index
    %c0_9 = arith.constant 0 : index
    %6 = vector.load %arg1[%c0_7, %c0_8, %c0_9] : memref<2x4x16xf32, #tpu.memory_space<vmem>>, vector<1x4x16xf32>
    %7 = vector.shape_cast %6 : vector<1x4x16xf32> to vector<4x16xf32>
    %cst = arith.constant 0.000000e+00 : f32
    %8 = vector.broadcast %cst : f32 to vector<8x16xf32>
    %c0_10 = arith.constant 0 : index
    %c0_11 = arith.constant 0 : index
    %c0_12 = arith.constant 0 : index
    %9 = vector.load %arg2[%c0_10, %c0_11, %c0_12] : memref<2x8x4xf32, #tpu.memory_space<vmem>>, vector<1x8x4xf32>
    %10 = vector.shape_cast %9 : vector<1x8x4xf32> to vector<8x4xf32>
    %c1_i32 = arith.constant 1 : i32
    %11 = tpu.dynamic_rotate %7 by %c1_i32 dim 1 : vector<4x16xf32>, i32 -> vector<4x16xf32>
    %c1_i32_13 = arith.constant 1 : i32
    %12 = vector.broadcast %c1_i32_13 : i32 to vector<4x16xi32>
    %13 = arith.cmpi sge, %4, %12 : vector<4x16xi32>
    %cst_14 = arith.constant 0.000000e+00 : f32
    %14 = vector.broadcast %cst_14 : f32 to vector<4x16xf32>
    %15 = arith.select %13, %11, %14 : vector<4x16xi1>, vector<4x16xf32>
    %cst_15 = arith.constant dense<0.000000e+00> : vector<8x16xf32>
    %16 = tpu.matmul %10, %15, %cst_15 {dimension_numbers = #tpu.dot_dimension_numbers<[1], [0], [0], [1], [0, 0, 1, 1], [], []>} : vector<8x4xf32>, vector<4x16xf32>, vector<8x16xf32> -> vector<8x16xf32>
    %17 = arith.addf %8, %16 : vector<8x16xf32>
    %c1 = arith.constant 1 : index
    %c0_16 = arith.constant 0 : index
    %c0_17 = arith.constant 0 : index
    %18 = vector.load %arg2[%c1, %c0_16, %c0_17] : memref<2x8x4xf32, #tpu.memory_space<vmem>>, vector<1x8x4xf32>
    %19 = vector.shape_cast %18 : vector<1x8x4xf32> to vector<8x4xf32>
    %cst_18 = arith.constant dense<0.000000e+00> : vector<8x16xf32>
    %20 = tpu.matmul %19, %7, %cst_18 {dimension_numbers = #tpu.dot_dimension_numbers<[1], [0], [0], [1], [0, 0, 1, 1], [], []>} : vector<8x4xf32>, vector<4x16xf32>, vector<8x16xf32> -> vector<8x16xf32>
    %21 = arith.addf %17, %20 : vector<8x16xf32>
    %22 = vector.broadcast %0 : vector<8x1xf32> to vector<8x16xf32>
    %23 = arith.addf %21, %22 : vector<8x16xf32>
    %cst_19 = arith.constant 0.000000e+00 : f32
    %24 = vector.broadcast %cst_19 : f32 to vector<8x16xf32>
    %25 = arith.maximumf %23, %24 : vector<8x16xf32>
    %cst_20 = arith.constant 0.000000e+00 : f32
    %26 = vector.broadcast %cst_20 : f32 to vector<8x16xf32>
    %c0_21 = arith.constant 0 : index
    %c0_22 = arith.constant 0 : index
    %c0_23 = arith.constant 0 : index
    %27 = vector.load %arg4[%c0_21, %c0_22, %c0_23] : memref<2x8x8xf32, #tpu.memory_space<vmem>>, vector<1x8x8xf32>
    %28 = vector.shape_cast %27 : vector<1x8x8xf32> to vector<8x8xf32>
    %c1_i32_24 = arith.constant 1 : i32
    %29 = tpu.dynamic_rotate %25 by %c1_i32_24 dim 1 : vector<8x16xf32>, i32 -> vector<8x16xf32>
    %c1_i32_25 = arith.constant 1 : i32
    %30 = vector.broadcast %c1_i32_25 : i32 to vector<8x16xi32>
    %31 = arith.cmpi sge, %5, %30 : vector<8x16xi32>
    %cst_26 = arith.constant 0.000000e+00 : f32
    %32 = vector.broadcast %cst_26 : f32 to vector<8x16xf32>
    %33 = arith.select %31, %29, %32 : vector<8x16xi1>, vector<8x16xf32>
    %cst_27 = arith.constant dense<0.000000e+00> : vector<8x16xf32>
    %34 = tpu.matmul %28, %33, %cst_27 {dimension_numbers = #tpu.dot_dimension_numbers<[1], [0], [0], [1], [0, 0, 1, 1], [], []>} : vector<8x8xf32>, vector<8x16xf32>, vector<8x16xf32> -> vector<8x16xf32>
    %35 = arith.addf %26, %34 : vector<8x16xf32>
    %c1_28 = arith.constant 1 : index
    %c0_29 = arith.constant 0 : index
    %c0_30 = arith.constant 0 : index
    %36 = vector.load %arg4[%c1_28, %c0_29, %c0_30] : memref<2x8x8xf32, #tpu.memory_space<vmem>>, vector<1x8x8xf32>
    %37 = vector.shape_cast %36 : vector<1x8x8xf32> to vector<8x8xf32>
    %cst_31 = arith.constant dense<0.000000e+00> : vector<8x16xf32>
    %38 = tpu.matmul %37, %25, %cst_31 {dimension_numbers = #tpu.dot_dimension_numbers<[1], [0], [0], [1], [0, 0, 1, 1], [], []>} : vector<8x8xf32>, vector<8x16xf32>, vector<8x16xf32> -> vector<8x16xf32>
    %39 = arith.addf %35, %38 : vector<8x16xf32>
    %40 = vector.broadcast %1 : vector<8x1xf32> to vector<8x16xf32>
    %41 = arith.addf %39, %40 : vector<8x16xf32>
    %cst_32 = arith.constant 0.000000e+00 : f32
    %42 = vector.broadcast %cst_32 : f32 to vector<8x16xf32>
    %43 = arith.maximumf %41, %42 : vector<8x16xf32>
    %cst_33 = arith.constant dense<0.000000e+00> : vector<8x16xf32>
    %44 = tpu.matmul %2, %7, %cst_33 {dimension_numbers = #tpu.dot_dimension_numbers<[1], [0], [0], [1], [0, 0, 1, 1], [], []>} : vector<8x4xf32>, vector<4x16xf32>, vector<8x16xf32> -> vector<8x16xf32>
    %45 = vector.broadcast %3 : vector<8x1xf32> to vector<8x16xf32>
    %46 = arith.addf %44, %45 : vector<8x16xf32>
    %47 = arith.addf %43, %46 : vector<8x16xf32>
    %cst_34 = arith.constant 0.000000e+00 : f32
    %48 = vector.broadcast %cst_34 : f32 to vector<8x16xf32>
    %49 = arith.maximumf %47, %48 : vector<8x16xf32>
    %c0_35 = arith.constant 0 : index
    %c0_36 = arith.constant 0 : index
    %c0_37 = arith.constant 0 : index
    %50 = vector.load %arg8[%c0_35, %c0_36, %c0_37] : memref<2x8x16xf32, #tpu.memory_space<vmem>>, vector<1x8x16xf32>
    %51 = vector.shape_cast %50 : vector<1x8x16xf32> to vector<8x16xf32>
    %52 = vector.shape_cast %49 : vector<8x16xf32> to vector<1x8x16xf32>
    tpu.vector_store %arg8[%c0_35, %c0_36, %c0_37], %52 {strides = array<i32>} : memref<2x8x16xf32, #tpu.memory_space<vmem>>, vector<1x8x16xf32>,
    %c1_38 = arith.constant 1 : index
    %c0_39 = arith.constant 0 : index
    %c0_40 = arith.constant 0 : index
    %53 = vector.load %arg1[%c1_38, %c0_39, %c0_40] : memref<2x4x16xf32, #tpu.memory_space<vmem>>, vector<1x4x16xf32>
    %54 = vector.shape_cast %53 : vector<1x4x16xf32> to vector<4x16xf32>
    %cst_41 = arith.constant 0.000000e+00 : f32
    %55 = vector.broadcast %cst_41 : f32 to vector<8x16xf32>
    %c0_42 = arith.constant 0 : index
    %c0_43 = arith.constant 0 : index
    %c0_44 = arith.constant 0 : index
    %56 = vector.load %arg2[%c0_42, %c0_43, %c0_44] : memref<2x8x4xf32, #tpu.memory_space<vmem>>, vector<1x8x4xf32>
    %57 = vector.shape_cast %56 : vector<1x8x4xf32> to vector<8x4xf32>
    %c1_i32_45 = arith.constant 1 : i32
    %58 = tpu.dynamic_rotate %54 by %c1_i32_45 dim 1 : vector<4x16xf32>, i32 -> vector<4x16xf32>
    %c1_i32_46 = arith.constant 1 : i32
    %59 = vector.broadcast %c1_i32_46 : i32 to vector<4x16xi32>
    %60 = arith.cmpi sge, %4, %59 : vector<4x16xi32>
    %cst_47 = arith.constant 0.000000e+00 : f32
    %61 = vector.broadcast %cst_47 : f32 to vector<4x16xf32>
    %62 = arith.select %60, %58, %61 : vector<4x16xi1>, vector<4x16xf32>
    %cst_48 = arith.constant dense<0.000000e+00> : vector<8x16xf32>
    %63 = tpu.matmul %57, %62, %cst_48 {dimension_numbers = #tpu.dot_dimension_numbers<[1], [0], [0], [1], [0, 0, 1, 1], [], []>} : vector<8x4xf32>, vector<4x16xf32>, vector<8x16xf32> -> vector<8x16xf32>
    %64 = arith.addf %55, %63 : vector<8x16xf32>
    %c1_49 = arith.constant 1 : index
    %c0_50 = arith.constant 0 : index
    %c0_51 = arith.constant 0 : index
    %65 = vector.load %arg2[%c1_49, %c0_50, %c0_51] : memref<2x8x4xf32, #tpu.memory_space<vmem>>, vector<1x8x4xf32>
    %66 = vector.shape_cast %65 : vector<1x8x4xf32> to vector<8x4xf32>
    %cst_52 = arith.constant dense<0.000000e+00> : vector<8x16xf32>
    %67 = tpu.matmul %66, %54, %cst_52 {dimension_numbers = #tpu.dot_dimension_numbers<[1], [0], [0], [1], [0, 0, 1, 1], [], []>} : vector<8x4xf32>, vector<4x16xf32>, vector<8x16xf32> -> vector<8x16xf32>
    %68 = arith.addf %64, %67 : vector<8x16xf32>
    %69 = vector.broadcast %0 : vector<8x1xf32> to vector<8x16xf32>
    %70 = arith.addf %68, %69 : vector<8x16xf32>
    %cst_53 = arith.constant 0.000000e+00 : f32
    %71 = vector.broadcast %cst_53 : f32 to vector<8x16xf32>
    %72 = arith.maximumf %70, %71 : vector<8x16xf32>
    %cst_54 = arith.constant 0.000000e+00 : f32
    %73 = vector.broadcast %cst_54 : f32 to vector<8x16xf32>
    %c0_55 = arith.constant 0 : index
    %c0_56 = arith.constant 0 : index
    %c0_57 = arith.constant 0 : index
    %74 = vector.load %arg4[%c0_55, %c0_56, %c0_57] : memref<2x8x8xf32, #tpu.memory_space<vmem>>, vector<1x8x8xf32>
    %75 = vector.shape_cast %74 : vector<1x8x8xf32> to vector<8x8xf32>
    %c1_i32_58 = arith.constant 1 : i32
    %76 = tpu.dynamic_rotate %72 by %c1_i32_58 dim 1 : vector<8x16xf32>, i32 -> vector<8x16xf32>
    %c1_i32_59 = arith.constant 1 : i32
    %77 = vector.broadcast %c1_i32_59 : i32 to vector<8x16xi32>
    %78 = arith.cmpi sge, %5, %77 : vector<8x16xi32>
    %cst_60 = arith.constant 0.000000e+00 : f32
    %79 = vector.broadcast %cst_60 : f32 to vector<8x16xf32>
    %80 = arith.select %78, %76, %79 : vector<8x16xi1>, vector<8x16xf32>
    %cst_61 = arith.constant dense<0.000000e+00> : vector<8x16xf32>
    %81 = tpu.matmul %75, %80, %cst_61 {dimension_numbers = #tpu.dot_dimension_numbers<[1], [0], [0], [1], [0, 0, 1, 1], [], []>} : vector<8x8xf32>, vector<8x16xf32>, vector<8x16xf32> -> vector<8x16xf32>
    %82 = arith.addf %73, %81 : vector<8x16xf32>
    %c1_62 = arith.constant 1 : index
    %c0_63 = arith.constant 0 : index
    %c0_64 = arith.constant 0 : index
    %83 = vector.load %arg4[%c1_62, %c0_63, %c0_64] : memref<2x8x8xf32, #tpu.memory_space<vmem>>, vector<1x8x8xf32>
    %84 = vector.shape_cast %83 : vector<1x8x8xf32> to vector<8x8xf32>
    %cst_65 = arith.constant dense<0.000000e+00> : vector<8x16xf32>
    %85 = tpu.matmul %84, %72, %cst_65 {dimension_numbers = #tpu.dot_dimension_numbers<[1], [0], [0], [1], [0, 0, 1, 1], [], []>} : vector<8x8xf32>, vector<8x16xf32>, vector<8x16xf32> -> vector<8x16xf32>
    %86 = arith.addf %82, %85 : vector<8x16xf32>
    %87 = vector.broadcast %1 : vector<8x1xf32> to vector<8x16xf32>
    %88 = arith.addf %86, %87 : vector<8x16xf32>
    %cst_66 = arith.constant 0.000000e+00 : f32
    %89 = vector.broadcast %cst_66 : f32 to vector<8x16xf32>
    %90 = arith.maximumf %88, %89 : vector<8x16xf32>
    %cst_67 = arith.constant dense<0.000000e+00> : vector<8x16xf32>
    %91 = tpu.matmul %2, %54, %cst_67 {dimension_numbers = #tpu.dot_dimension_numbers<[1], [0], [0], [1], [0, 0, 1, 1], [], []>} : vector<8x4xf32>, vector<4x16xf32>, vector<8x16xf32> -> vector<8x16xf32>
    %92 = vector.broadcast %3 : vector<8x1xf32> to vector<8x16xf32>
    %93 = arith.addf %91, %92 : vector<8x16xf32>
    %94 = arith.addf %90, %93 : vector<8x16xf32>
    %cst_68 = arith.constant 0.000000e+00 : f32
    %95 = vector.broadcast %cst_68 : f32 to vector<8x16xf32>
    %96 = arith.maximumf %94, %95 : vector<8x16xf32>
    %c1_69 = arith.constant 1 : index
    %c0_70 = arith.constant 0 : index
    %c0_71 = arith.constant 0 : index
    %97 = vector.load %arg8[%c1_69, %c0_70, %c0_71] : memref<2x8x16xf32, #tpu.memory_space<vmem>>, vector<1x8x16xf32>
    %98 = vector.shape_cast %97 : vector<1x8x16xf32> to vector<8x16xf32>
    %99 = vector.shape_cast %96 : vector<8x16xf32> to vector<1x8x16xf32>
    tpu.vector_store %arg8[%c1_69, %c0_70, %c0_71], %99 {strides = array<i32>} : memref<2x8x16xf32, #tpu.memory_space<vmem>>, vector<1x8x16xf32>,
    return
  }
  func.func @transform_0(%arg0: i32) -> (i32, i32, i32) {
    %c0_i32 = arith.constant 0 : i32
    %c0_i32_0 = arith.constant 0 : i32
    %c0_i32_1 = arith.constant 0 : i32
    return %arg0, %c0_i32, %c0_i32_0 : i32, i32, i32
  }
  func.func @transform_1(%arg0: i32) -> (i32, i32, i32) {
    %c0_i32 = arith.constant 0 : i32
    %c0_i32_0 = arith.constant 0 : i32
    %c0_i32_1 = arith.constant 0 : i32
    %c0_i32_2 = arith.constant 0 : i32
    return %c0_i32, %c0_i32_0, %c0_i32_1 : i32, i32, i32
  }
  func.func @transform_2(%arg0: i32) -> (i32, i32) {
    %c0_i32 = arith.constant 0 : i32
    %c0_i32_0 = arith.constant 0 : i32
    %c0_i32_1 = arith.constant 0 : i32
    return %c0_i32, %c0_i32_0 : i32, i32
  }
  func.func @transform_3(%arg0: i32) -> (i32, i32, i32) {
    %c0_i32 = arith.constant 0 : i32
    %c0_i32_0 = arith.constant 0 : i32
    %c0_i32_1 = arith.constant 0 : i32
    %c0_i32_2 = arith.constant 0 : i32
    return %c0_i32, %c0_i32_0, %c0_i32_1 : i32, i32, i32
  }
  func.func @transform_4(%arg0: i32) -> (i32, i32) {
    %c0_i32 = arith.constant 0 : i32
    %c0_i32_0 = arith.constant 0 : i32
    %c0_i32_1 = arith.constant 0 : i32
    return %c0_i32, %c0_i32_0 : i32, i32
  }
  func.func @transform_5(%arg0: i32) -> (i32, i32) {
    %c0_i32 = arith.constant 0 : i32
    %c0_i32_0 = arith.constant 0 : i32
    %c0_i32_1 = arith.constant 0 : i32
    return %c0_i32, %c0_i32_0 : i32, i32
  }
  func.func @transform_6(%arg0: i32) -> (i32, i32) {
    %c0_i32 = arith.constant 0 : i32
    %c0_i32_0 = arith.constant 0 : i32
    %c0_i32_1 = arith.constant 0 : i32
    return %c0_i32, %c0_i32_0 : i32, i32
  }
  func.func @transform_7(%arg0: i32) -> (i32, i32, i32) {
    %c0_i32 = arith.constant 0 : i32
    %c0_i32_0 = arith.constant 0 : i32
    %c0_i32_1 = arith.constant 0 : i32
    return %arg0, %c0_i32, %c0_i32_0 : i32, i32, i32
  }
}

module attributes {stable_mosaic.version = 11 : i64} {
  func.func @_tcn_block_kernel(%arg0: i32, %arg1: memref<2x8x16xf32, #tpu.memory_space<vmem>>, %arg2: memref<2x8x8xf32, #tpu.memory_space<vmem>>, %arg3: memref<8x1xf32, #tpu.memory_space<vmem>>, %arg4: memref<2x8x8xf32, #tpu.memory_space<vmem>>, %arg5: memref<8x1xf32, #tpu.memory_space<vmem>>, %arg6: memref<5x8xf32, #tpu.memory_space<vmem>>, %arg7: memref<5x1xf32, #tpu.memory_space<vmem>>, %arg8: memref<2x5x1xf32, #tpu.memory_space<vmem>>) attributes {dimension_semantics = [#tpu.dimension_semantics<parallel>], iteration_bounds = array<i64: 1>, scalar_prefetch = 0 : i64, scratch_operands = 0 : i64, tpu.core_type = #tpu.core_type<tc>, window_params = [{transform_indices = @transform_0, window_bounds = array<i64: 2, 8, 16>}, {pipeline_mode = #tpu.pipeline_mode<synchronous>, transform_indices = @transform_1, window_bounds = array<i64: 2, 8, 8>}, {pipeline_mode = #tpu.pipeline_mode<synchronous>, transform_indices = @transform_2, window_bounds = array<i64: 8, 1>}, {pipeline_mode = #tpu.pipeline_mode<synchronous>, transform_indices = @transform_3, window_bounds = array<i64: 2, 8, 8>}, {pipeline_mode = #tpu.pipeline_mode<synchronous>, transform_indices = @transform_4, window_bounds = array<i64: 8, 1>}, {pipeline_mode = #tpu.pipeline_mode<synchronous>, transform_indices = @transform_5, window_bounds = array<i64: 5, 8>}, {pipeline_mode = #tpu.pipeline_mode<synchronous>, transform_indices = @transform_6, window_bounds = array<i64: 5, 1>}, {transform_indices = @transform_7, window_bounds = array<i64: 2, 5, 1>}]} {
    %c0 = arith.constant 0 : index
    %c0_0 = arith.constant 0 : index
    %0 = vector.load %arg3[%c0, %c0_0] : memref<8x1xf32, #tpu.memory_space<vmem>>, vector<8x1xf32>
    %c0_1 = arith.constant 0 : index
    %c0_2 = arith.constant 0 : index
    %1 = vector.load %arg5[%c0_1, %c0_2] : memref<8x1xf32, #tpu.memory_space<vmem>>, vector<8x1xf32>
    %c0_3 = arith.constant 0 : index
    %c0_4 = arith.constant 0 : index
    %2 = vector.load %arg6[%c0_3, %c0_4] : memref<5x8xf32, #tpu.memory_space<vmem>>, vector<5x8xf32>
    %c0_5 = arith.constant 0 : index
    %c0_6 = arith.constant 0 : index
    %3 = vector.load %arg7[%c0_5, %c0_6] : memref<5x1xf32, #tpu.memory_space<vmem>>, vector<5x1xf32>
    %4 = tpu.iota {dimensions = array<i32: 1>} : vector<5x16xi32>
    %5 = tpu.iota {dimensions = array<i32: 1>} : vector<8x16xi32>
    %6 = tpu.iota {dimensions = array<i32: 1>} : vector<8x16xi32>
    %c0_7 = arith.constant 0 : index
    %c0_8 = arith.constant 0 : index
    %c0_9 = arith.constant 0 : index
    %7 = vector.load %arg1[%c0_7, %c0_8, %c0_9] : memref<2x8x16xf32, #tpu.memory_space<vmem>>, vector<1x8x16xf32>
    %8 = vector.shape_cast %7 : vector<1x8x16xf32> to vector<8x16xf32>
    %cst = arith.constant 0.000000e+00 : f32
    %9 = vector.broadcast %cst : f32 to vector<8x16xf32>
    %c0_10 = arith.constant 0 : index
    %c0_11 = arith.constant 0 : index
    %c0_12 = arith.constant 0 : index
    %10 = vector.load %arg2[%c0_10, %c0_11, %c0_12] : memref<2x8x8xf32, #tpu.memory_space<vmem>>, vector<1x8x8xf32>
    %11 = vector.shape_cast %10 : vector<1x8x8xf32> to vector<8x8xf32>
    %c2_i32 = arith.constant 2 : i32
    %12 = tpu.dynamic_rotate %8 by %c2_i32 dim 1 : vector<8x16xf32>, i32 -> vector<8x16xf32>
    %c2_i32_13 = arith.constant 2 : i32
    %13 = vector.broadcast %c2_i32_13 : i32 to vector<8x16xi32>
    %14 = arith.cmpi sge, %5, %13 : vector<8x16xi32>
    %cst_14 = arith.constant 0.000000e+00 : f32
    %15 = vector.broadcast %cst_14 : f32 to vector<8x16xf32>
    %16 = arith.select %14, %12, %15 : vector<8x16xi1>, vector<8x16xf32>
    %cst_15 = arith.constant dense<0.000000e+00> : vector<8x16xf32>
    %17 = tpu.matmul %11, %16, %cst_15 {dimension_numbers = #tpu.dot_dimension_numbers<[1], [0], [0], [1], [0, 0, 1, 1], [], []>} : vector<8x8xf32>, vector<8x16xf32>, vector<8x16xf32> -> vector<8x16xf32>
    %18 = arith.addf %9, %17 : vector<8x16xf32>
    %c1 = arith.constant 1 : index
    %c0_16 = arith.constant 0 : index
    %c0_17 = arith.constant 0 : index
    %19 = vector.load %arg2[%c1, %c0_16, %c0_17] : memref<2x8x8xf32, #tpu.memory_space<vmem>>, vector<1x8x8xf32>
    %20 = vector.shape_cast %19 : vector<1x8x8xf32> to vector<8x8xf32>
    %cst_18 = arith.constant dense<0.000000e+00> : vector<8x16xf32>
    %21 = tpu.matmul %20, %8, %cst_18 {dimension_numbers = #tpu.dot_dimension_numbers<[1], [0], [0], [1], [0, 0, 1, 1], [], []>} : vector<8x8xf32>, vector<8x16xf32>, vector<8x16xf32> -> vector<8x16xf32>
    %22 = arith.addf %18, %21 : vector<8x16xf32>
    %23 = vector.broadcast %0 : vector<8x1xf32> to vector<8x16xf32>
    %24 = arith.addf %22, %23 : vector<8x16xf32>
    %cst_19 = arith.constant 0.000000e+00 : f32
    %25 = vector.broadcast %cst_19 : f32 to vector<8x16xf32>
    %26 = arith.maximumf %24, %25 : vector<8x16xf32>
    %cst_20 = arith.constant 0.000000e+00 : f32
    %27 = vector.broadcast %cst_20 : f32 to vector<8x16xf32>
    %c0_21 = arith.constant 0 : index
    %c0_22 = arith.constant 0 : index
    %c0_23 = arith.constant 0 : index
    %28 = vector.load %arg4[%c0_21, %c0_22, %c0_23] : memref<2x8x8xf32, #tpu.memory_space<vmem>>, vector<1x8x8xf32>
    %29 = vector.shape_cast %28 : vector<1x8x8xf32> to vector<8x8xf32>
    %c2_i32_24 = arith.constant 2 : i32
    %30 = tpu.dynamic_rotate %26 by %c2_i32_24 dim 1 : vector<8x16xf32>, i32 -> vector<8x16xf32>
    %c2_i32_25 = arith.constant 2 : i32
    %31 = vector.broadcast %c2_i32_25 : i32 to vector<8x16xi32>
    %32 = arith.cmpi sge, %6, %31 : vector<8x16xi32>
    %cst_26 = arith.constant 0.000000e+00 : f32
    %33 = vector.broadcast %cst_26 : f32 to vector<8x16xf32>
    %34 = arith.select %32, %30, %33 : vector<8x16xi1>, vector<8x16xf32>
    %cst_27 = arith.constant dense<0.000000e+00> : vector<8x16xf32>
    %35 = tpu.matmul %29, %34, %cst_27 {dimension_numbers = #tpu.dot_dimension_numbers<[1], [0], [0], [1], [0, 0, 1, 1], [], []>} : vector<8x8xf32>, vector<8x16xf32>, vector<8x16xf32> -> vector<8x16xf32>
    %36 = arith.addf %27, %35 : vector<8x16xf32>
    %c1_28 = arith.constant 1 : index
    %c0_29 = arith.constant 0 : index
    %c0_30 = arith.constant 0 : index
    %37 = vector.load %arg4[%c1_28, %c0_29, %c0_30] : memref<2x8x8xf32, #tpu.memory_space<vmem>>, vector<1x8x8xf32>
    %38 = vector.shape_cast %37 : vector<1x8x8xf32> to vector<8x8xf32>
    %cst_31 = arith.constant dense<0.000000e+00> : vector<8x16xf32>
    %39 = tpu.matmul %38, %26, %cst_31 {dimension_numbers = #tpu.dot_dimension_numbers<[1], [0], [0], [1], [0, 0, 1, 1], [], []>} : vector<8x8xf32>, vector<8x16xf32>, vector<8x16xf32> -> vector<8x16xf32>
    %40 = arith.addf %36, %39 : vector<8x16xf32>
    %41 = vector.broadcast %1 : vector<8x1xf32> to vector<8x16xf32>
    %42 = arith.addf %40, %41 : vector<8x16xf32>
    %cst_32 = arith.constant 0.000000e+00 : f32
    %43 = vector.broadcast %cst_32 : f32 to vector<8x16xf32>
    %44 = arith.maximumf %42, %43 : vector<8x16xf32>
    %45 = arith.addf %44, %8 : vector<8x16xf32>
    %cst_33 = arith.constant 0.000000e+00 : f32
    %46 = vector.broadcast %cst_33 : f32 to vector<8x16xf32>
    %47 = arith.maximumf %45, %46 : vector<8x16xf32>
    %cst_34 = arith.constant dense<0.000000e+00> : vector<5x16xf32>
    %48 = tpu.matmul %2, %47, %cst_34 {dimension_numbers = #tpu.dot_dimension_numbers<[1], [0], [0], [1], [0, 0, 1, 1], [], []>} : vector<5x8xf32>, vector<8x16xf32>, vector<5x16xf32> -> vector<5x16xf32>
    %c15_i32 = arith.constant 15 : i32
    %49 = vector.broadcast %c15_i32 : i32 to vector<5x16xi32>
    %50 = arith.cmpi eq, %4, %49 : vector<5x16xi32>
    %cst_35 = arith.constant 0.000000e+00 : f32
    %51 = vector.broadcast %cst_35 : f32 to vector<5x16xf32>
    %52 = arith.select %50, %48, %51 : vector<5x16xi1>, vector<5x16xf32>
    %cst_36 = arith.constant dense<0.000000e+00> : vector<5xf32>
    %53 = vector.multi_reduction <add>, %52, %cst_36 [1] : vector<5x16xf32> to vector<5xf32>
    %54 = vector.shape_cast %53 : vector<5xf32> to vector<5x1xf32>
    %55 = arith.addf %54, %3 : vector<5x1xf32>
    %c0_37 = arith.constant 0 : index
    %c0_38 = arith.constant 0 : index
    %c0_39 = arith.constant 0 : index
    %56 = vector.load %arg8[%c0_37, %c0_38, %c0_39] : memref<2x5x1xf32, #tpu.memory_space<vmem>>, vector<1x5x1xf32>
    %57 = vector.shape_cast %56 : vector<1x5x1xf32> to vector<5x1xf32>
    %58 = vector.shape_cast %55 : vector<5x1xf32> to vector<1x5x1xf32>
    tpu.vector_store %arg8[%c0_37, %c0_38, %c0_39], %58 {strides = array<i32>} : memref<2x5x1xf32, #tpu.memory_space<vmem>>, vector<1x5x1xf32>,
    %c1_40 = arith.constant 1 : index
    %c0_41 = arith.constant 0 : index
    %c0_42 = arith.constant 0 : index
    %59 = vector.load %arg1[%c1_40, %c0_41, %c0_42] : memref<2x8x16xf32, #tpu.memory_space<vmem>>, vector<1x8x16xf32>
    %60 = vector.shape_cast %59 : vector<1x8x16xf32> to vector<8x16xf32>
    %cst_43 = arith.constant 0.000000e+00 : f32
    %61 = vector.broadcast %cst_43 : f32 to vector<8x16xf32>
    %c0_44 = arith.constant 0 : index
    %c0_45 = arith.constant 0 : index
    %c0_46 = arith.constant 0 : index
    %62 = vector.load %arg2[%c0_44, %c0_45, %c0_46] : memref<2x8x8xf32, #tpu.memory_space<vmem>>, vector<1x8x8xf32>
    %63 = vector.shape_cast %62 : vector<1x8x8xf32> to vector<8x8xf32>
    %c2_i32_47 = arith.constant 2 : i32
    %64 = tpu.dynamic_rotate %60 by %c2_i32_47 dim 1 : vector<8x16xf32>, i32 -> vector<8x16xf32>
    %c2_i32_48 = arith.constant 2 : i32
    %65 = vector.broadcast %c2_i32_48 : i32 to vector<8x16xi32>
    %66 = arith.cmpi sge, %5, %65 : vector<8x16xi32>
    %cst_49 = arith.constant 0.000000e+00 : f32
    %67 = vector.broadcast %cst_49 : f32 to vector<8x16xf32>
    %68 = arith.select %66, %64, %67 : vector<8x16xi1>, vector<8x16xf32>
    %cst_50 = arith.constant dense<0.000000e+00> : vector<8x16xf32>
    %69 = tpu.matmul %63, %68, %cst_50 {dimension_numbers = #tpu.dot_dimension_numbers<[1], [0], [0], [1], [0, 0, 1, 1], [], []>} : vector<8x8xf32>, vector<8x16xf32>, vector<8x16xf32> -> vector<8x16xf32>
    %70 = arith.addf %61, %69 : vector<8x16xf32>
    %c1_51 = arith.constant 1 : index
    %c0_52 = arith.constant 0 : index
    %c0_53 = arith.constant 0 : index
    %71 = vector.load %arg2[%c1_51, %c0_52, %c0_53] : memref<2x8x8xf32, #tpu.memory_space<vmem>>, vector<1x8x8xf32>
    %72 = vector.shape_cast %71 : vector<1x8x8xf32> to vector<8x8xf32>
    %cst_54 = arith.constant dense<0.000000e+00> : vector<8x16xf32>
    %73 = tpu.matmul %72, %60, %cst_54 {dimension_numbers = #tpu.dot_dimension_numbers<[1], [0], [0], [1], [0, 0, 1, 1], [], []>} : vector<8x8xf32>, vector<8x16xf32>, vector<8x16xf32> -> vector<8x16xf32>
    %74 = arith.addf %70, %73 : vector<8x16xf32>
    %75 = vector.broadcast %0 : vector<8x1xf32> to vector<8x16xf32>
    %76 = arith.addf %74, %75 : vector<8x16xf32>
    %cst_55 = arith.constant 0.000000e+00 : f32
    %77 = vector.broadcast %cst_55 : f32 to vector<8x16xf32>
    %78 = arith.maximumf %76, %77 : vector<8x16xf32>
    %cst_56 = arith.constant 0.000000e+00 : f32
    %79 = vector.broadcast %cst_56 : f32 to vector<8x16xf32>
    %c0_57 = arith.constant 0 : index
    %c0_58 = arith.constant 0 : index
    %c0_59 = arith.constant 0 : index
    %80 = vector.load %arg4[%c0_57, %c0_58, %c0_59] : memref<2x8x8xf32, #tpu.memory_space<vmem>>, vector<1x8x8xf32>
    %81 = vector.shape_cast %80 : vector<1x8x8xf32> to vector<8x8xf32>
    %c2_i32_60 = arith.constant 2 : i32
    %82 = tpu.dynamic_rotate %78 by %c2_i32_60 dim 1 : vector<8x16xf32>, i32 -> vector<8x16xf32>
    %c2_i32_61 = arith.constant 2 : i32
    %83 = vector.broadcast %c2_i32_61 : i32 to vector<8x16xi32>
    %84 = arith.cmpi sge, %6, %83 : vector<8x16xi32>
    %cst_62 = arith.constant 0.000000e+00 : f32
    %85 = vector.broadcast %cst_62 : f32 to vector<8x16xf32>
    %86 = arith.select %84, %82, %85 : vector<8x16xi1>, vector<8x16xf32>
    %cst_63 = arith.constant dense<0.000000e+00> : vector<8x16xf32>
    %87 = tpu.matmul %81, %86, %cst_63 {dimension_numbers = #tpu.dot_dimension_numbers<[1], [0], [0], [1], [0, 0, 1, 1], [], []>} : vector<8x8xf32>, vector<8x16xf32>, vector<8x16xf32> -> vector<8x16xf32>
    %88 = arith.addf %79, %87 : vector<8x16xf32>
    %c1_64 = arith.constant 1 : index
    %c0_65 = arith.constant 0 : index
    %c0_66 = arith.constant 0 : index
    %89 = vector.load %arg4[%c1_64, %c0_65, %c0_66] : memref<2x8x8xf32, #tpu.memory_space<vmem>>, vector<1x8x8xf32>
    %90 = vector.shape_cast %89 : vector<1x8x8xf32> to vector<8x8xf32>
    %cst_67 = arith.constant dense<0.000000e+00> : vector<8x16xf32>
    %91 = tpu.matmul %90, %78, %cst_67 {dimension_numbers = #tpu.dot_dimension_numbers<[1], [0], [0], [1], [0, 0, 1, 1], [], []>} : vector<8x8xf32>, vector<8x16xf32>, vector<8x16xf32> -> vector<8x16xf32>
    %92 = arith.addf %88, %91 : vector<8x16xf32>
    %93 = vector.broadcast %1 : vector<8x1xf32> to vector<8x16xf32>
    %94 = arith.addf %92, %93 : vector<8x16xf32>
    %cst_68 = arith.constant 0.000000e+00 : f32
    %95 = vector.broadcast %cst_68 : f32 to vector<8x16xf32>
    %96 = arith.maximumf %94, %95 : vector<8x16xf32>
    %97 = arith.addf %96, %60 : vector<8x16xf32>
    %cst_69 = arith.constant 0.000000e+00 : f32
    %98 = vector.broadcast %cst_69 : f32 to vector<8x16xf32>
    %99 = arith.maximumf %97, %98 : vector<8x16xf32>
    %cst_70 = arith.constant dense<0.000000e+00> : vector<5x16xf32>
    %100 = tpu.matmul %2, %99, %cst_70 {dimension_numbers = #tpu.dot_dimension_numbers<[1], [0], [0], [1], [0, 0, 1, 1], [], []>} : vector<5x8xf32>, vector<8x16xf32>, vector<5x16xf32> -> vector<5x16xf32>
    %c15_i32_71 = arith.constant 15 : i32
    %101 = vector.broadcast %c15_i32_71 : i32 to vector<5x16xi32>
    %102 = arith.cmpi eq, %4, %101 : vector<5x16xi32>
    %cst_72 = arith.constant 0.000000e+00 : f32
    %103 = vector.broadcast %cst_72 : f32 to vector<5x16xf32>
    %104 = arith.select %102, %100, %103 : vector<5x16xi1>, vector<5x16xf32>
    %cst_73 = arith.constant dense<0.000000e+00> : vector<5xf32>
    %105 = vector.multi_reduction <add>, %104, %cst_73 [1] : vector<5x16xf32> to vector<5xf32>
    %106 = vector.shape_cast %105 : vector<5xf32> to vector<5x1xf32>
    %107 = arith.addf %106, %3 : vector<5x1xf32>
    %c1_74 = arith.constant 1 : index
    %c0_75 = arith.constant 0 : index
    %c0_76 = arith.constant 0 : index
    %108 = vector.load %arg8[%c1_74, %c0_75, %c0_76] : memref<2x5x1xf32, #tpu.memory_space<vmem>>, vector<1x5x1xf32>
    %109 = vector.shape_cast %108 : vector<1x5x1xf32> to vector<5x1xf32>
    %110 = vector.shape_cast %107 : vector<5x1xf32> to vector<1x5x1xf32>
    tpu.vector_store %arg8[%c1_74, %c0_75, %c0_76], %110 {strides = array<i32>} : memref<2x5x1xf32, #tpu.memory_space<vmem>>, vector<1x5x1xf32>,
    return
  }
  func.func @transform_0(%arg0: i32) -> (i32, i32, i32) {
    %c0_i32 = arith.constant 0 : i32
    %c0_i32_0 = arith.constant 0 : i32
    %c0_i32_1 = arith.constant 0 : i32
    return %arg0, %c0_i32, %c0_i32_0 : i32, i32, i32
  }
  func.func @transform_1(%arg0: i32) -> (i32, i32, i32) {
    %c0_i32 = arith.constant 0 : i32
    %c0_i32_0 = arith.constant 0 : i32
    %c0_i32_1 = arith.constant 0 : i32
    %c0_i32_2 = arith.constant 0 : i32
    return %c0_i32, %c0_i32_0, %c0_i32_1 : i32, i32, i32
  }
  func.func @transform_2(%arg0: i32) -> (i32, i32) {
    %c0_i32 = arith.constant 0 : i32
    %c0_i32_0 = arith.constant 0 : i32
    %c0_i32_1 = arith.constant 0 : i32
    return %c0_i32, %c0_i32_0 : i32, i32
  }
  func.func @transform_3(%arg0: i32) -> (i32, i32, i32) {
    %c0_i32 = arith.constant 0 : i32
    %c0_i32_0 = arith.constant 0 : i32
    %c0_i32_1 = arith.constant 0 : i32
    %c0_i32_2 = arith.constant 0 : i32
    return %c0_i32, %c0_i32_0, %c0_i32_1 : i32, i32, i32
  }
  func.func @transform_4(%arg0: i32) -> (i32, i32) {
    %c0_i32 = arith.constant 0 : i32
    %c0_i32_0 = arith.constant 0 : i32
    %c0_i32_1 = arith.constant 0 : i32
    return %c0_i32, %c0_i32_0 : i32, i32
  }
  func.func @transform_5(%arg0: i32) -> (i32, i32) {
    %c0_i32 = arith.constant 0 : i32
    %c0_i32_0 = arith.constant 0 : i32
    %c0_i32_1 = arith.constant 0 : i32
    return %c0_i32, %c0_i32_0 : i32, i32
  }
  func.func @transform_6(%arg0: i32) -> (i32, i32) {
    %c0_i32 = arith.constant 0 : i32
    %c0_i32_0 = arith.constant 0 : i32
    %c0_i32_1 = arith.constant 0 : i32
    return %c0_i32, %c0_i32_0 : i32, i32
  }
  func.func @transform_7(%arg0: i32) -> (i32, i32, i32) {
    %c0_i32 = arith.constant 0 : i32
    %c0_i32_0 = arith.constant 0 : i32
    %c0_i32_1 = arith.constant 0 : i32
    return %arg0, %c0_i32, %c0_i32_0 : i32, i32, i32
  }
}

</mosaic_0001>

<bundles_post_ra>
// kernel: class_tcnet_forward.3
= control target key start
LH: loop header
LB: loop body
LE: loop exit
PB: predicated region body
PF: predicated region fallthrough
CT: control target
= control target key end

     0   :  { %s386_s26 = smov 16   ;;  %vm34_vm0 = vcmask 1047680   ;;  %s387_s27 = smov 114   ;;  %vm49_vm1 = vcmask 64512   ;;  %v388_v7 = vmov 0   ;;  %v30_v8 = vlaneseq  ;;  %s527_s0 = inlined_call_operand.vmem [shape: f32[2,8,16], index: 0, kind: input, shape index: {}]   ;;  %s528_s1 = inlined_call_operand.vmem [shape: f32[2,8,8], index: 1, kind: input, shape index: {}]   ;;  %s529_s2 = inlined_call_operand.vmem [shape: f32[8,1], index: 2, kind: input, shape index: {}]   ;;  %s530_s3 = inlined_call_operand.vmem [shape: f32[2,8,8], index: 3, kind: input, shape index: {}]   ;;  %s531_s4 = inlined_call_operand.vmem [shape: f32[8,1], index: 4, kind: input, shape index: {}]   ;;  %s532_s5 = inlined_call_operand.vmem [shape: f32[5,8], index: 5, kind: input, shape index: {}]   ;;  %s533_s6 = inlined_call_operand.vmem [shape: f32[5,1], index: 6, kind: input, shape index: {}]   ;;  %s534_s7 = inlined_call_operand.vmem [shape: f32[2,5,1], index: 7, kind: output, shape index: {}]  }
   0x1   :  { %v432_v0 = vld [vmem:[%s527_s0] sm:$0xff]  ;;  %v446_v5 = vld [vmem:[%s527_s0 + $0x8] sm:$0xff]  ;;  %384 = vset.pattern.permute.xlu2 %v388_v7  ;;  %385 = vset.pattern.permute.xlu0 %v388_v7  ;;  %vm197_vm4 = vcmask 126976   ;;  %vm202_vm5 = vcmask 4096  }
   0x2   :  { %35 = vrot.lane.b32.xlu0 %v432_v0, %s386_s26  ;;  %68 = vmatpush.msra.mxu0 %v432_v0  ;;  %v361_v6 = vld [vmem:[%s528_s1 + $0x8] sm:$0xff]  ;;  %v454_v9 = vand.u32 127, %v30_v8  ;;  %v33_v10 = vld [vmem:[%s528_s1] sm:$0xff] }
   0x3   :  { %362 = vmatmul.msk.f32.vlgmr.msra.gmra.mxu0 %vm49_vm1, %v361_v6  ;;  %v26_v14 = vld [vmem:[%s529_s2] sm:$0xff]  ;;  %v365_v23 = vld [vmem:[%s530_s3 + $0x8] sm:$0xff] }
   0x4   :  { %vm41_vm2 = vcmp.ge.s32.totalorder %v454_v9, 2  ;;  %v27_v35 = vld [vmem:[%s531_s4] sm:$0xff]  ;;  %vm195_vm3 = vcmp.eq.s32.totalorder %v454_v9, 15 }
   0x5   :  { %v103_v36 = vld [vmem:[%s530_s3] sm:$0xff] }
   0x6   :  { %v28_v49 = vld [vmem:[%s532_s5] sm:$0x1f] }
   0x7   :  { %v29_v61 = vld [vmem:[%s533_s6] sm:$0x1f] }
  0x74   :  { %v36_v1 = vpop.permute.xlu0 %35 }
  0x75   :  { %v37_v2 = vsel %vm34_vm0, %v36_v1, %v432_v0 }
  0x76   :  { %38 = vrot.lane.b32.xlu0 %v37_v2, %s386_s26 }
  0x80   :  { %v70_v17 = vpop.f32.mrf.mxu0 }
  0xe8   :  { %v39_v3 = vpop.permute.xlu0 %38 }
  0xe9   :  { %v40_v4 = vsel %vm34_vm0, %v39_v3, %v432_v0 }
  0xea   :  { %43 = vrot.lane.b32.xlu1 %v40_v4, %s387_s27 }
  0xf2   :  { %207 = vrot.lane.b32.xlu1 %v446_v5, %s386_s26 }
 0x15c   :  { %v44_v11 = vpop.permute.xlu1 %43 }
 0x15d   :  { %363 = vmatpush.msk.msra.mxu1 %vm41_vm2, %v44_v11 }
 0x15e   :  { %364 = vmatmul.msk.f32.vlgmr.msra.gmra.mxu1 %vm49_vm1, %v33_v10 }
 0x15f   :  { %237 = vmatpush.msrb.mxu1 %v446_v5 }
 0x164   :  { %v208_v12 = vpop.permute.xlu1 %207 }
 0x165   :  { %v209_v13 = vsel %vm34_vm0, %v208_v12, %v446_v5 }
 0x166   :  { %210 = vrot.lane.b32.xlu2 %v209_v13, %s386_s26  ;;  %372 = vmatmul.msk.f32.vlgmr.msrb.gmra.mxu1 %vm49_vm1, %v361_v6 }
 0x16e   :  { %98 = vperm.xlu2 %384, %v26_v14  }
 0x1c0   :  { %v211_v15 = vpop.permute.xlu2 %210 }
 0x1c1   :  { %v212_v16 = vsel %vm34_vm0, %v211_v15, %v446_v5 }
 0x1c2   :  { %214 = vrot.lane.b32.xlu0 %v212_v16, %s387_s27 }
 0x1c8   :  { %v99_v19 = vpop.permute.xlu2 %98 }
 0x1db   :  { %v93_v18 = vpop.f32.mrf.mxu1 }
 0x1dc   :  { %v94_v20 = vadd.f32 %v93_v18, %v70_v17 }
 0x1de   :  { %v101_v21 = vadd.f32 %v99_v19, %v94_v20 }
 0x1e0   :  { %v102_v22 = vmax.f32 %v101_v21, 0.0 }
 0x1e2   :  { %104 = vrot.lane.b32.xlu1 %v102_v22, %s386_s26  ;;  %135 = vmatpush.msra.mxu2 %v102_v22 }
 0x1e3   :  { %366 = vmatmul.msk.f32.vlgmr.msra.gmra.mxu2 %vm49_vm1, %v365_v23  ;;  %v239_v30 = vpop.f32.mrf.mxu1 }
 0x234   :  { %v215_v24 = vpop.permute.xlu0 %214 }
 0x235   :  { %373 = vmatpush.msk.msrb.mxu2 %vm41_vm2, %v215_v24 }
 0x236   :  { %374 = vmatmul.msk.f32.vlgmr.msrb.gmra.mxu2 %vm49_vm1, %v33_v10 }
 0x254   :  { %v105_v25 = vpop.permute.xlu1 %104 }
 0x255   :  { %v106_v26 = vsel %vm34_vm0, %v105_v25, %v102_v22 }
 0x256   :  { %107 = vrot.lane.b32.xlu2 %v106_v26, %s386_s26 }
 0x266   :  { %v137_v27 = vpop.f32.mrf.mxu2 }
 0x2b0   :  { %v108_v28 = vpop.permute.xlu2 %107 }
 0x2b1   :  { %v109_v29 = vsel %vm34_vm0, %v108_v28, %v102_v22 }
 0x2b2   :  { %111 = vrot.lane.b32.xlu0 %v109_v29, %s387_s27 }
 0x2b9   :  { %v262_v31 = vpop.f32.mrf.mxu2 }
 0x2ba   :  { %v263_v32 = vadd.f32 %v262_v31, %v239_v30  ;;  %165 = vperm.xlu0 %385, %v27_v35  }
 0x2bc   :  { %v265_v33 = vadd.f32 %v263_v32, %v99_v19 }
 0x2be   :  { %v266_v34 = vmax.f32 %v265_v33, 0.0 }
 0x2c0   :  { %268 = vrot.lane.b32.xlu1 %v266_v34, %s386_s26 }
 0x324   :  { %v112_v37 = vpop.permute.xlu0 %111 }
 0x325   :  { %367 = vmatpush.msk.msra.mxu3 %vm41_vm2, %v112_v37 }
 0x326   :  { %368 = vmatmul.msk.f32.vlgmr.msra.gmra.mxu3 %vm49_vm1, %v103_v36 }
 0x327   :  { %298 = vmatpush.msrb.mxu3 %v266_v34 }
 0x32c   :  { %v166_v43 = vpop.permute.xlu0 %165 }
 0x32e   :  { %376 = vmatmul.msk.f32.vlgmr.msrb.gmra.mxu3 %vm49_vm1, %v365_v23 }
 0x332   :  { %v269_v38 = vpop.permute.xlu1 %268 }
 0x333   :  { %v270_v39 = vsel %vm34_vm0, %v269_v38, %v266_v34 }
 0x334   :  { %271 = vrot.lane.b32.xlu2 %v270_v39, %s386_s26 }
 0x38e   :  { %v272_v40 = vpop.permute.xlu2 %271 }
 0x38f   :  { %v273_v41 = vsel %vm34_vm0, %v272_v40, %v266_v34 }
 0x390   :  { %275 = vrot.lane.b32.xlu1 %v273_v41, %s387_s27 }
 0x3a9   :  { %v160_v42 = vpop.f32.mrf.mxu3 }
 0x3aa   :  { %v161_v44 = vadd.f32 %v160_v42, %v137_v27 }
 0x3ac   :  { %v168_v45 = vadd.f32 %v166_v43, %v161_v44 }
 0x3ae   :  { %v169_v46 = vmax.f32 %v168_v45, 0.0 }
 0x3b0   :  { %v170_v47 = vadd.f32 %v169_v46, %v432_v0 }
 0x3b1   :  { %v300_v54 = vpop.f32.mrf.mxu3 }
 0x3b2   :  { %v171_v48 = vmax.f32 %v170_v47, 0.0 }
 0x3b4   :  { %190 = vmatpush.msrb.mxu0 %v171_v48 }
 0x3b5   :  { %369 = vmatmul.msk.f32.vlgmr.msrb.gmra.mxu0 %vm49_vm1, %v28_v49 }
 0x402   :  { %v276_v50 = vpop.permute.xlu1 %275 }
 0x403   :  { %377 = vmatpush.msk.msra.mxu0 %vm41_vm2, %v276_v50 }
 0x404   :  { %378 = vmatmul.msk.f32.vlgmr.msra.gmra.mxu0 %vm49_vm1, %v103_v36 }
 0x432   :  { %v192_v51 = vpop.f32.mrf.mxu0 }
 0x433   :  { %v196_v52 = vsel %vm195_vm3, %v192_v51, 0.0 }
 0x434   :  { %v198_v53 = vsel %vm197_vm4, %v196_v52, 0.0 }
 0x435   :  { %199 = vadd.xlane.f32.xlu2 %v198_v53 }
 0x481   :  { %v323_v55 = vpop.f32.mrf.mxu0 }
 0x482   :  { %v324_v56 = vadd.f32 %v323_v55, %v300_v54 }
 0x484   :  { %v326_v57 = vadd.f32 %v324_v56, %v166_v43 }
 0x486   :  { %v327_v58 = vmax.f32 %v326_v57, 0.0 }
 0x488   :  { %v328_v59 = vadd.f32 %v446_v5, %v327_v58 }
 0x48a   :  { %v329_v60 = vmax.f32 %v328_v59, 0.0 }
 0x48c   :  { %345 = vmatpush.msra.mxu1 %v329_v60 }
 0x48d   :  { %379 = vmatmul.msk.f32.vlgmr.msra.gmra.mxu1 %vm49_vm1, %v28_v49 }
 0x4a8   :  { %v200_v62 = vpop.xlane.xlu2 %199 }
 0x4a9   :  { %v201_v63 = vadd.f32 %v200_v62, %v29_v61 }
 0x4ab   :  { %203 = vst.msk [vmem:[%s534_s7] sm:$0x1f] %vm202_vm5, %v201_v63 }
 0x50a   :  { %v347_v0 = vpop.f32.mrf.mxu1 }
 0x50b   :  { %v350_v1 = vsel %vm195_vm3, %v347_v0, 0.0 }
 0x50c   :  { %v351_v2 = vsel %vm197_vm4, %v350_v1, 0.0 }
 0x50d   :  { %352 = vadd.xlane.f32.xlu1 %v351_v2 }
 0x580   :  { %v353_v3 = vpop.xlane.xlu1 %352 }
 0x581   :  { %v354_v4 = vadd.f32 %v353_v3, %v29_v61 }
 0x583   :  { %380 = vst.msk [vmem:[%s534_s7 + $0x8] sm:$0x1f] %vm202_vm5, %v354_v4 }

// kernel: class_tcnet_forward.2
= control target key start
LH: loop header
LB: loop body
LE: loop exit
PB: predicated region body
PF: predicated region fallthrough
CT: control target
= control target key end

     0   :  { %s398_s26 = smov 16   ;;  %vm34_vm0 = vcmask 1047680   ;;  %s399_s27 = smov 113   ;;  %vm53_vm1 = vcmask 1043456   ;;  %vm49_vm2 = vcmask 31744   ;;  %v400_v7 = vmov 0   ;;  %s524_s0 = inlined_call_operand.vmem [shape: f32[2,4,16], index: 0, kind: input, shape index: {}]   ;;  %s525_s1 = inlined_call_operand.vmem [shape: f32[2,8,4], index: 1, kind: input, shape index: {}]   ;;  %s526_s2 = inlined_call_operand.vmem [shape: f32[8,1], index: 2, kind: input, shape index: {}]   ;;  %s527_s3 = inlined_call_operand.vmem [shape: f32[2,8,8], index: 3, kind: input, shape index: {}]   ;;  %s528_s5 = inlined_call_operand.vmem [shape: f32[8,4], index: 5, kind: input, shape index: {}]   ;;  %s529_s6 = inlined_call_operand.vmem [shape: f32[8,1], index: 6, kind: input, shape index: {}]   ;;  %s530_s4 = inlined_call_operand.vmem [shape: f32[8,1], index: 4, kind: input, shape index: {}]   ;;  %s531_s7 = inlined_call_operand.vmem [shape: f32[2,8,16], index: 7, kind: output, shape index: {}]  }
   0x1   :  { %v32_v0 = vld [vmem:[%s524_s0] sm:$0xf]  ;;  %v379_v5 = vld [vmem:[%s524_s0 + $0x4] sm:$0xf]  ;;  %v368_v6 = vld [vmem:[%s525_s1 + $0x8] sm:$0xff]  ;;  %395 = vset.pattern.permute.xlu2 %v400_v7  ;;  %396 = vset.pattern.permute.xlu1 %v400_v7  ;;  %v30_v8 = vlaneseq  ;;  %vm124_vm4 = vcmask 64512  }
   0x2   :  { %35 = vrot.lane.b32.xlu0 %v32_v0, %s398_s26  ;;  %369 = vmatpush.msk.msra.mxu0 %vm53_vm1, %v32_v0  ;;  %v33_v11 = vld [vmem:[%s525_s1] sm:$0xff]  ;;  %v373_v24 = vld [vmem:[%s527_s3 + $0x8] sm:$0xff]  ;;  %vm208_vm5 = vcmask 130048  }
   0x3   :  { %370 = vmatmul.msk.f32.vlgmr.msra.gmra.mxu0 %vm49_vm2, %v368_v6  ;;  %397 = vset.pattern.permute.xlu0 %v400_v7  ;;  %v459_v9 = vand.u32 127, %v30_v8  ;;  %v26_v15 = vld [vmem:[%s526_s2] sm:$0xff] }
   0x4   :  { %377 = vmatpush.msk.msrb.mxu0 %vm53_vm1, %v32_v0  ;;  %v28_v27 = vld [vmem:[%s528_s5] sm:$0xff] }
   0x5   :  { %vm41_vm3 = vcmp.ge.s32.totalorder %v459_v9, 1  ;;  %v29_v38 = vld [vmem:[%s529_s6] sm:$0xff] }
   0x6   :  { %v27_v41 = vld [vmem:[%s530_s4] sm:$0xff] }
   0x7   :  { %v110_v42 = vld [vmem:[%s527_s3] sm:$0xff] }
   0xb   :  { %378 = vmatmul.msk.f32.vlgmr.msrb.gmra.mxu0 %vm49_vm2, %v28_v27 }
  0x74   :  { %v36_v1 = vpop.permute.xlu0 %35 }
  0x75   :  { %v37_v2 = vsel %vm34_vm0, %v36_v1, %v32_v0 }
  0x76   :  { %38 = vrot.lane.b32.xlu0 %v37_v2, %s398_s26 }
  0x80   :  { %v74_v18 = vpop.f32.mrf.mxu0 }
  0x88   :  { %v203_v49 = vpop.f32.mrf.mxu0 }
  0xe8   :  { %v39_v3 = vpop.permute.xlu0 %38 }
  0xe9   :  { %v40_v4 = vsel %vm34_vm0, %v39_v3, %v32_v0 }
  0xea   :  { %43 = vrot.lane.b32.xlu1 %v40_v4, %s399_s27 }
  0xf2   :  { %213 = vrot.lane.b32.xlu1 %v379_v5, %s398_s26 }
 0x15c   :  { %v44_v10 = vpop.permute.xlu1 %43 }
 0x15d   :  { %v46_v12 = vsel %vm41_vm3, %v44_v10, 0.0 }
 0x15e   :  { %371 = vmatpush.msk.msra.mxu1 %vm53_vm1, %v46_v12 }
 0x15f   :  { %372 = vmatmul.msk.f32.vlgmr.msra.gmra.mxu1 %vm49_vm2, %v33_v11 }
 0x160   :  { %381 = vmatpush.msk.msrb.mxu1 %vm53_vm1, %v379_v5 }
 0x162   :  { %389 = vmatpush.msk.msra.mxu1 %vm53_vm1, %v379_v5 }
 0x164   :  { %v214_v13 = vpop.permute.xlu1 %213 }
 0x165   :  { %v215_v14 = vsel %vm34_vm0, %v214_v13, %v379_v5 }
 0x166   :  { %216 = vrot.lane.b32.xlu2 %v215_v14, %s398_s26 }
 0x167   :  { %382 = vmatmul.msk.f32.vlgmr.msrb.gmra.mxu1 %vm49_vm2, %v368_v6 }
 0x16e   :  { %105 = vperm.xlu2 %395, %v26_v15  }
 0x16f   :  { %390 = vmatmul.msk.f32.vlgmr.msra.gmra.mxu1 %vm49_vm2, %v28_v27 }
 0x1c0   :  { %v217_v16 = vpop.permute.xlu2 %216 }
 0x1c1   :  { %v218_v17 = vsel %vm34_vm0, %v217_v16, %v379_v5 }
 0x1c2   :  { %220 = vrot.lane.b32.xlu0 %v218_v17, %s399_s27 }
 0x1c8   :  { %v106_v20 = vpop.permute.xlu2 %105 }
 0x1dc   :  { %v100_v19 = vpop.f32.mrf.mxu1 }
 0x1dd   :  { %v101_v21 = vadd.f32 %v100_v19, %v74_v18 }
 0x1df   :  { %v108_v22 = vadd.f32 %v106_v20, %v101_v21 }
 0x1e1   :  { %v109_v23 = vmax.f32 %v108_v22, 0.0 }
 0x1e3   :  { %111 = vrot.lane.b32.xlu1 %v109_v23, %s398_s26  ;;  %143 = vmatpush.msra.mxu2 %v109_v23 }
 0x1e4   :  { %374 = vmatmul.msk.f32.vlgmr.msra.gmra.mxu2 %vm124_vm4, %v373_v24  ;;  %v248_v31 = vpop.f32.mrf.mxu1 }
 0x1ec   :  { %v357_v60 = vpop.f32.mrf.mxu1 }
 0x234   :  { %v221_v25 = vpop.permute.xlu0 %220 }
 0x235   :  { %v223_v26 = vsel %vm41_vm3, %v221_v25, 0.0 }
 0x236   :  { %383 = vmatpush.msk.msrb.mxu2 %vm53_vm1, %v223_v26 }
 0x237   :  { %384 = vmatmul.msk.f32.vlgmr.msrb.gmra.mxu2 %vm49_vm2, %v33_v11 }
 0x255   :  { %v112_v28 = vpop.permute.xlu1 %111 }
 0x256   :  { %v113_v29 = vsel %vm34_vm0, %v112_v28, %v109_v23 }
 0x257   :  { %114 = vrot.lane.b32.xlu0 %v113_v29, %s398_s26 }
 0x267   :  { %v145_v30 = vpop.f32.mrf.mxu2 }
 0x2ba   :  { %v274_v32 = vpop.f32.mrf.mxu2 }
 0x2bb   :  { %v275_v33 = vadd.f32 %v274_v32, %v248_v31 }
 0x2bd   :  { %v277_v34 = vadd.f32 %v275_v33, %v106_v20 }
 0x2bf   :  { %v278_v35 = vmax.f32 %v277_v34, 0.0 }
 0x2c1   :  { %280 = vrot.lane.b32.xlu2 %v278_v35, %s398_s26 }
 0x2c9   :  { %v115_v36 = vpop.permute.xlu0 %114 }
 0x2ca   :  { %v116_v37 = vsel %vm34_vm0, %v115_v36, %v109_v23 }
 0x2cb   :  { %118 = vrot.lane.b32.xlu2 %v116_v37, %s399_s27 }
 0x2d3   :  { %180 = vperm.xlu2 %395, %v29_v38  }
 0x31b   :  { %v281_v39 = vpop.permute.xlu2 %280 }
 0x31c   :  { %v282_v40 = vsel %vm34_vm0, %v281_v39, %v278_v35 }
 0x31d   :  { %283 = vrot.lane.b32.xlu1 %v282_v40, %s398_s26 }
 0x325   :  { %v119_v43 = vpop.permute.xlu2 %118  ;;  %173 = vperm.xlu1 %396, %v27_v41  }
 0x326   :  { %375 = vmatpush.msk.msra.mxu3 %vm41_vm3, %v119_v43 }
 0x327   :  { %376 = vmatmul.msk.f32.vlgmr.msra.gmra.mxu3 %vm124_vm4, %v110_v42 }
 0x328   :  { %310 = vmatpush.msrb.mxu3 %v278_v35 }
 0x32d   :  { %v181_v50 = vpop.permute.xlu2 %180 }
 0x32e   :  { %v204_v52 = vadd.f32 %v203_v49, %v181_v50  ;;  %v358_v62 = vadd.f32 %v357_v60, %v181_v50 }
 0x32f   :  { %386 = vmatmul.msk.f32.vlgmr.msrb.gmra.mxu3 %vm124_vm4, %v373_v24 }
 0x38f   :  { %v284_v44 = vpop.permute.xlu1 %283 }
 0x390   :  { %v285_v45 = vsel %vm34_vm0, %v284_v44, %v278_v35 }
 0x391   :  { %287 = vrot.lane.b32.xlu0 %v285_v45, %s399_s27 }
 0x397   :  { %v174_v47 = vpop.permute.xlu1 %173 }
 0x3aa   :  { %v168_v46 = vpop.f32.mrf.mxu3 }
 0x3ab   :  { %v169_v48 = vadd.f32 %v168_v46, %v145_v30 }
 0x3ad   :  { %v176_v51 = vadd.f32 %v174_v47, %v169_v48 }
 0x3af   :  { %v177_v53 = vmax.f32 %v176_v51, 0.0 }
 0x3b1   :  { %v206_v54 = vadd.f32 %v204_v52, %v177_v53 }
 0x3b2   :  { %v312_v57 = vpop.f32.mrf.mxu3 }
 0x3b3   :  { %v207_v55 = vmax.f32 %v206_v54, 0.0 }
 0x3b5   :  { %209 = vst.msk [vmem:[%s531_s7] sm:$0xff] %vm208_vm5, %v207_v55 }
 0x403   :  { %v288_v56 = vpop.permute.xlu0 %287 }
 0x404   :  { %387 = vmatpush.msk.msra.mxu0 %vm41_vm3, %v288_v56 }
 0x405   :  { %388 = vmatmul.msk.f32.vlgmr.msra.gmra.mxu0 %vm124_vm4, %v110_v42 }
 0x482   :  { %v335_v58 = vpop.f32.mrf.mxu0 }
 0x483   :  { %v336_v59 = vadd.f32 %v335_v58, %v312_v57 }
 0x485   :  { %v338_v61 = vadd.f32 %v336_v59, %v174_v47 }
 0x487   :  { %v339_v63 = vmax.f32 %v338_v61, 0.0 }
 0x489   :  { %v360_v0 = vadd.f32 %v358_v62, %v339_v63 }
 0x48b   :  { %v361_v1 = vmax.f32 %v360_v0, 0.0 }
 0x48d   :  { %391 = vst.msk [vmem:[%s531_s7 + $0x8] sm:$0xff] %vm208_vm5, %v361_v1 }

</bundles_post_ra>
